<compile_context>
chip_gen: v5e
topology: v5e:2x2
jax: 0.10.0
libtpu: 0.0.40
codegen_flags: <defaults>
</compile_context>

<pallas_src>
import functools

import jax
import jax.numpy as jnp
from jax.experimental import pallas as pl
from jax.experimental.pallas import tpu as pltpu

LANES = 128
DEFAULT_BLOCK_ROWS = 2048  # (2048, 128) f32 tile = 1 MiB per input per buffer


def _mse_sum_kernel(x_ref, y_ref, o_ref, acc_ref, *, valid_rows, block_rows):
    """Per tile: acc += (x - y)^2 ; last step: scalar sum -> SMEM output."""
    i = pl.program_id(0)

    @pl.when(i == 0)
    def _():
        acc_ref[...] = jnp.zeros_like(acc_ref)

    d = x_ref[...].astype(jnp.float32) - y_ref[...].astype(jnp.float32)
    d2 = d * d
    if valid_rows % block_rows != 0:
        # Only the last (partial) tile has rows past the array extent; the DMA
        # leaves stale data there, so zero those rows before accumulating.
        row = i * block_rows + jax.lax.broadcasted_iota(jnp.int32, d2.shape, 0)
        d2 = jnp.where(row < valid_rows, d2, 0.0)
    acc_ref[...] += d2

    @pl.when(i == pl.num_programs(0) - 1)
    def _():
        o_ref[0, 0] = jnp.sum(acc_ref[...])


@functools.partial(jax.jit, static_argnames=("block_rows",))
def mse_loss(inp, target, *, block_rows=DEFAULT_BLOCK_ROWS):
    assert inp.shape == target.shape, "MSELoss requires matching shapes"
    assert block_rows % 8 == 0
    n_elems = inp.size

    # Keep native dtype; the kernel upcasts per-tile on the VPU.
    x = jnp.ravel(inp)
    y = jnp.ravel(target)

    rows = pl.cdiv(n_elems, LANES)
    pad = rows * LANES - n_elems
    if pad:
        # Only when the flat size isn't lane-aligned; padded positions
        # contribute (0 - 0)^2 = 0, so they are numerically inert.
        x = jnp.pad(x, (0, pad))
        y = jnp.pad(y, (0, pad))
    x = x.reshape(rows, LANES)
    y = y.reshape(rows, LANES)

    # One full-extent block for small inputs, otherwise large multiple-of-8
    # tiles with the ragged row tail masked in-kernel.
    bm = rows if rows <= block_rows else block_rows
    grid = (pl.cdiv(rows, bm),)

    kernel = functools.partial(_mse_sum_kernel, valid_rows=rows, block_rows=bm)

    sq_sum = pl.pallas_call(
        kernel,
        out_shape=jax.ShapeDtypeStruct((1, 1), jnp.float32),
        grid_spec=pltpu.PrefetchScalarGridSpec(
            num_scalar_prefetch=0,
            grid=grid,
            in_specs=[
                pl.BlockSpec((bm, LANES), lambda i: (i, 0)),
                pl.BlockSpec((bm, LANES), lambda i: (i, 0)),
            ],
            out_specs=pl.BlockSpec(
                (1, 1), lambda i: (0, 0), memory_space=pltpu.SMEM
            ),
            scratch_shapes=[pltpu.VMEM((bm, LANES), jnp.float32)],
        ),
        compiler_params=pltpu.CompilerParams(
            dimension_semantics=("arbitrary",),
        ),
    )(x, y)

    # mean reduction (nn.MSELoss default); returns a scalar like PyTorch.
    return (sq_sum[0, 0] / jnp.float32(n_elems)).astype(jnp.float32)


if __name__ == "__main__":
    key = jax.random.PRNGKey(0)

    # Primary example: small NCHW tensors (batch=2, channels=4, 16x16).
    k1, k2 = jax.random.split(key)
    inp = jax.random.normal(k1, (2, 4, 16, 16), dtype=jnp.float32)
    tgt = jax.random.normal(k2, (2, 4, 16, 16), dtype=jnp.float32)
    loss = mse_loss(inp, tgt)
    jax.block_until_ready(loss)
    ref = jnp.mean((inp - tgt) ** 2)
    assert jnp.allclose(loss, ref, rtol=1e-5, atol=1e-6), (loss, ref)

    # Non-lane-aligned shape (exercises the tail pad, full-extent block).
    k3, k4 = jax.random.split(k1)
    a = jax.random.normal(k3, (3, 5, 7, 11), dtype=jnp.float32)
    b = jax.random.normal(k4, (3, 5, 7, 11), dtype=jnp.float32)
    loss2 = mse_loss(a, b)
    jax.block_until_ready(loss2)
    ref2 = jnp.mean((a - b) ** 2)
    assert jnp.allclose(loss2, ref2, rtol=1e-5, atol=1e-6), (loss2, ref2)

    # Larger input (exercises the multi-tile grid + in-kernel row masking).
    k5, k6 = jax.random.split(k2)
    c = jax.random.normal(k5, (4, 8, 100, 100), dtype=jnp.float32)
    d = jax.random.normal(k6, (4, 8, 100, 100), dtype=jnp.float32)
    loss3 = mse_loss(c, d)
    jax.block_until_ready(loss3)
    ref3 = jnp.mean((c - d) ** 2)
    assert jnp.allclose(loss3, ref3, rtol=1e-4, atol=1e-6), (loss3, ref3)

    print("KERNEL_OK")
</pallas_src>

<mosaic_0001>
module attributes {stable_mosaic.version = 11 : i64} {
  func.func @_mse_sum_kernel(%arg0: i32, %arg1: memref<16x128xf32, #tpu.memory_space<vmem>>, %arg2: memref<16x128xf32, #tpu.memory_space<vmem>>, %arg3: memref<1x1xf32, #tpu.memory_space<smem>>, %arg4: memref<16x128xf32, #tpu.memory_space<vmem>>) attributes {dimension_semantics = [#tpu.dimension_semantics<arbitrary>], iteration_bounds = array<i64: 1>, scalar_prefetch = 0 : i64, scratch_operands = 1 : i64, tpu.core_type = #tpu.core_type<tc>, window_params = [{transform_indices = @transform_0, window_bounds = array<i64: 16, 128>}, {transform_indices = @transform_1, window_bounds = array<i64: 16, 128>}, {transform_indices = @transform_2, window_bounds = array<i64: 1, 1>}]} {
    %c0_i32 = arith.constant 0 : i32
    %0 = arith.cmpi eq, %arg0, %c0_i32 : i32
    %1 = arith.extui %0 : i1 to i32
    %c0_i32_0 = arith.constant 0 : i32
    %2 = arith.cmpi ne, %1, %c0_i32_0 : i32
    scf.if %2 {
      %cst = arith.constant 0.000000e+00 : f32
      %13 = vector.broadcast %cst : f32 to vector<16x128xf32>
      %c0_10 = arith.constant 0 : index
      %c0_11 = arith.constant 0 : index
      %14 = vector.load %arg4[%c0_10, %c0_11] : memref<16x128xf32, #tpu.memory_space<vmem>>, vector<16x128xf32>
      tpu.vector_store %arg4[%c0_10, %c0_11], %13 {strides = array<i32>} : memref<16x128xf32, #tpu.memory_space<vmem>>, vector<16x128xf32>,
    } else {
    }
    %c0 = arith.constant 0 : index
    %c0_1 = arith.constant 0 : index
    %3 = vector.load %arg1[%c0, %c0_1] : memref<16x128xf32, #tpu.memory_space<vmem>>, vector<16x128xf32>
    %c0_2 = arith.constant 0 : index
    %c0_3 = arith.constant 0 : index
    %4 = vector.load %arg2[%c0_2, %c0_3] : memref<16x128xf32, #tpu.memory_space<vmem>>, vector<16x128xf32>
    %5 = arith.subf %3, %4 : vector<16x128xf32>
    %6 = arith.mulf %5, %5 : vector<16x128xf32>
    %c0_4 = arith.constant 0 : index
    %c0_5 = arith.constant 0 : index
    %7 = vector.load %arg4[%c0_4, %c0_5] : memref<16x128xf32, #tpu.memory_space<vmem>>, vector<16x128xf32>
    %8 = arith.addf %7, %6 : vector<16x128xf32>
    %c0_6 = arith.constant 0 : index
    %c0_7 = arith.constant 0 : index
    %9 = vector.load %arg4[%c0_6, %c0_7] : memref<16x128xf32, #tpu.memory_space<vmem>>, vector<16x128xf32>
    tpu.vector_store %arg4[%c0_6, %c0_7], %8 {strides = array<i32>} : memref<16x128xf32, #tpu.memory_space<vmem>>, vector<16x128xf32>,
    %c0_i32_8 = arith.constant 0 : i32
    %10 = arith.cmpi eq, %arg0, %c0_i32_8 : i32
    %11 = arith.extui %10 : i1 to i32
    %c0_i32_9 = arith.constant 0 : i32
    %12 = arith.cmpi ne, %11, %c0_i32_9 : i32
    scf.if %12 {
      %c0_10 = arith.constant 0 : index
      %c0_11 = arith.constant 0 : index
      %13 = vector.load %arg4[%c0_10, %c0_11] : memref<16x128xf32, #tpu.memory_space<vmem>>, vector<16x128xf32>
      %14 = vector.shape_cast %13 : vector<16x128xf32> to vector<1x16x128xf32>
      %cst = arith.constant dense<0.000000e+00> : vector<1xf32>
      %15 = vector.multi_reduction <add>, %14, %cst [1, 2] : vector<1x16x128xf32> to vector<1xf32>
      %16 = vector.shape_cast %15 : vector<1xf32> to vector<1x1x1xf32>
      %17 = vector.extract %16[0, 0, 0] : f32 from vector<1x1x1xf32>
      %c0_12 = arith.constant 0 : index
      %c0_13 = arith.constant 0 : index
      %18 = memref.load %arg3[%c0_12, %c0_13] : memref<1x1xf32, #tpu.memory_space<smem>>
      memref.store %17, %arg3[%c0_12, %c0_13] : memref<1x1xf32, #tpu.memory_space<smem>>
    } else {
    }
    return
  }
  func.func @transform_0(%arg0: i32) -> (i32, i32) {
    %c0_i32 = arith.constant 0 : i32
    %c0_i32_0 = arith.constant 0 : i32
    return %arg0, %c0_i32 : i32, i32
  }
  func.func @transform_1(%arg0: i32) -> (i32, i32) {
    %c0_i32 = arith.constant 0 : i32
    %c0_i32_0 = arith.constant 0 : i32
    return %arg0, %c0_i32 : i32, i32
  }
  func.func @transform_2(%arg0: i32) -> (i32, i32) {
    %c0_i32 = arith.constant 0 : i32
    %c0_i32_0 = arith.constant 0 : i32
    %c0_i32_1 = arith.constant 0 : i32
    return %c0_i32, %c0_i32_0 : i32, i32
  }
}

</mosaic_0001>

<bundles_post_ra>
// kernel: mse_loss.1
= control target key start
LH: loop header
LB: loop body
LE: loop exit
PB: predicated region body
PF: predicated region fallthrough
CT: control target
= control target key end

     0   :  { %s112_s0 = inlined_call_operand.vmem [shape: f32[16,128], index: 0, kind: input, shape index: {}]   ;;  %s113_s1 = inlined_call_operand.vmem [shape: f32[16,128], index: 1, kind: input, shape index: {}]   ;;  %s114_s2 = inlined_call_operand.hbm [shape: f32[1,1], index: 2, kind: output, shape index: {}]  }
   0x1   :  { %v18_v0 = vld [vmem:[%s112_s0] sm:$0xff]  ;;  %v19_v1 = vld [vmem:[%s112_s0 + $0x8] sm:$0xff] }
   0x2   :  { %v20_v2 = vld [vmem:[%s113_s1] sm:$0xff]  ;;  %v21_v3 = vld [vmem:[%s113_s1 + $0x8] sm:$0xff] }
   0x3   :  { %v22_v4 = vsub.f32 %v18_v0, %v20_v2 }
   0x4   :  { %7 = vsyncpa [#allocation4], 0  ;;  %v23_v5 = vsub.f32 %v19_v1, %v21_v3  ;;  %s54_s18 = sshll.u32 %s114_s2, 4  ;;  %s81_s19 = smov [#allocation3]   ;;  %s55_s18 = int_to_ptr.hbm [resolvable:$true] %s54_s18 }
   0x5   :  { %v24_v6 = vmul.f32 %v22_v4, %v22_v4 }
   0x6   :  { %v25_v7 = vmul.f32 %v23_v5, %v23_v5 }
   0x8   :  { %v37_v8 = vadd.f32 %v25_v7, %v24_v6 }
   0xa   :  { %38 = vadd.xlane.f32.xlu0 %v37_v8 }
  0x7d   :  { %v39_v9 = vpop.xlane.xlu0 %38 }
  0x7e   :  { %v40_v10 = vrot.slane %v39_v9, 4 }
  0x80   :  { %v41_v11 = vadd.f32 %v40_v10, %v39_v9 }
  0x82   :  { %v42_v12 = vrot.slane %v41_v11, 2 }
  0x84   :  { %v43_v13 = vadd.f32 %v42_v12, %v41_v11 }
  0x86   :  { %v44_v14 = vrot.slane %v43_v13, 1 }
  0x88   :  { %v45_v15 = vadd.f32 %v44_v14, %v43_v13 }
  0x8a   :  { %64 = vpush %v45_v15 }
  0xbb   :  { %s65_s1 = spop %64 }
  0xbc   :  { %48 = sst [smem:[#allocation3]] %s65_s1 }
  0xbd   :  { %57 = dma.smem_to_hbm %s81_s19, 16, %s55_s18, [#allocation4]  }
  0xbe   :  { %79 = dma.done.wait [#allocation4], 16  }
  0xbf   :  { %80 = vsyncadd [#allocation4], 4294967280 }
  0xc0   :  { %62 = sfence }
  0xc1   :  { %63 = vsyncpa [#allocation4], 1 }

</bundles_post_ra>
